<compile_context>
chip_gen: v7x
topology: tpu7x:2x2x1
jax: 0.10.0
libtpu: 0.0.40
codegen_flags: <defaults>
</compile_context>

<pallas_src>
import functools

import jax
import jax.numpy as jnp
from jax.experimental import pallas as pl
from jax.experimental.pallas import tpu as pltpu

FILTERS = (2, 3, 4)
NUM_CLASSES = 3
LANE = 128
NSH = max(FILTERS)            # number of shift blocks in the K-augmented operand


def _round_up(n, m):
    return (n + m - 1) // m * m


def _pick_batch_tile(B, S, target_rows=512):
    """Blocks must contain whole batch elements (roll wrap stays masked).

    Returns either the full batch (single block) or a multiple-of-8 divisor of B
    so every BlockSpec obeys the (8, 128) tiling rule.
    """
    if B * S <= target_rows or B < 8:
        return B
    bt = max(8, (target_rows // max(S, 1)) // 8 * 8)
    bt = min(bt, (B // 8) * 8)
    while bt > 8 and B % bt:
        bt -= 8
    return bt if (bt > 0 and B % bt == 0) else B


def cnn2d_kernel(x_ref, convw_ref, fcw_ref, aux_ref, mask_ref, o_ref, *, Bt, S, E, C):
    """Fused conv(fs=2,3,4) + ReLU + time-max-pool + (fc1∘fc2) + softmax.

    x_ref    : (Bt*S, E)     f32   whole batch elements
    convw_ref: (NSH*E, C)    bf16  K-augmented packed conv weights
    fcw_ref  : (C, LANE)     bf16  fc1_w @ fc2_w, zero padded
    aux_ref  : (8, C)        f32   row 0 = conv bias, row 1 = folded fc bias
                                   (-1e30 on pad lanes)
    mask_ref : (S, C)        f32   1.0 where the conv window is valid, else 0.0
    o_ref    : (Bt, LANE)    f32   lane-dense softmax output
    """
    R = Bt * S

    # ---- K-augmented MXU operand: X_aug[r, d*E:(d+1)*E] = x[(r + d) % R] -----
    # Wrapped rows (across the block end or a batch-element boundary) only ever
    # contribute to (row, lane) positions that the validity mask zeroes below.
    x32 = x_ref[...]                                             # (R, E) f32
    blocks = [x32]
    for d in range(1, NSH):
        blocks.append(pltpu.roll(x32, shift=R - d, axis=0))      # row r <- row r+d
    x_aug = jnp.concatenate(blocks, axis=1).astype(jnp.bfloat16)  # (R, NSH*E) bf16

    # ---- all three filter banks in ONE bf16 MXU matmul, K = NSH*E ------------
    conv = jnp.dot(x_aug, convw_ref[...],
                   preferred_element_type=jnp.float32)           # (R, C) f32
    act = jnp.maximum(conv + aux_ref[0:1, :], 0.0)               # bias + ReLU

    # ---- mask invalid/wrapped window rows, max-pool over time ----------------
    # ReLU output >= 0 and every filter has >= 1 valid window, so zeroing the
    # invalid rows cannot change the max.
    act3 = act.reshape(Bt, S, C)
    feats = jnp.max(act3 * mask_ref[...][None, :, :], axis=1)    # (Bt, C) f32

    # ---- folded fc1∘fc2 (dropout p=0 is identity) + softmax ------------------
    # TODO(synk): dropout omitted — module default p=0.0 (identity at inference).
    logits = jnp.dot(feats.astype(jnp.bfloat16), fcw_ref[...],
                     preferred_element_type=jnp.float32)         # (Bt, LANE)
    logits = logits + aux_ref[1:2, 0:LANE]                       # pad lanes -> -1e30

    m = jnp.max(logits, axis=1, keepdims=True)
    e = jnp.exp(logits - m)                                      # pad lanes -> 0
    o_ref[...] = e / jnp.sum(e, axis=1, keepdims=True)


def pack_params(params, S, E, F):
    """Host-side packing of the 11 module parameters (done once, reused)."""
    C = _round_up(3 * F, LANE)

    # conv_w: K-augmented layout, row d*E + e, lane i*F + f  <-  w_fs[d, e, f].
    w_big = jnp.zeros((NSH * E, C), jnp.float32)
    bias_row = jnp.zeros((C,), jnp.float32)
    for i, (fs, wk, bk) in enumerate(zip(FILTERS, ('w2', 'w3', 'w4'),
                                         ('b2', 'b3', 'b4'))):
        w = params[wk]                                           # (fs, E, F)
        for d in range(fs):
            w_big = w_big.at[d * E:(d + 1) * E, i * F:(i + 1) * F].set(w[d])
        bias_row = bias_row.at[i * F:(i + 1) * F].set(params[bk][0])
    conv_w = w_big.astype(jnp.bfloat16)                          # (NSH*E, C) bf16

    # fc: fc1 and fc2 folded into one affine (no nonlinearity between them).
    w_fc = params['fc1_w'] @ params['fc2_w']                     # (3F, NUM_CLASSES)
    b_fc = params['fc1_b'] @ params['fc2_w'] + params['fc2_b']   # (1, NUM_CLASSES)
    fc_w = (jnp.zeros((C, LANE), jnp.float32)
            .at[:3 * F, :NUM_CLASSES].set(w_fc)).astype(jnp.bfloat16)

    # aux (f32): row 0 = conv bias, row 1 = folded fc bias (-1e30 on pad lanes).
    fc_bias = jnp.full((C,), -1e30, jnp.float32).at[:NUM_CLASSES].set(b_fc[0])
    aux = (jnp.zeros((8, C), jnp.float32)
           .at[0, :].set(bias_row)
           .at[1, :].set(fc_bias))

    # mask (f32, (S, C)): 1.0 where time position l is a valid window start.
    mask = jnp.zeros((S, C), jnp.float32)
    for i, fs in enumerate(FILTERS):
        mask = mask.at[:S - fs + 1, i * F:(i + 1) * F].set(1.0)

    return conv_w, fc_w, aux, mask


def cnn2d_forward(x, params):
    B, S, E = x.shape
    F = params['w2'].shape[2]
    C = _round_up(3 * F, LANE)
    assert S >= max(FILTERS), "sequence must be at least as long as the widest filter"

    # In production the packing would be done once and reused across calls.
    conv_w, fc_w, aux, mask = pack_params(params, S, E, F)
    x_flat = x.reshape(B * S, E)

    Bt = _pick_batch_tile(B, S)
    grid = (B // Bt,)
    kernel = functools.partial(cnn2d_kernel, Bt=Bt, S=S, E=E, C=C)

    out = pl.pallas_call(
        kernel,
        out_shape=jax.ShapeDtypeStruct((B, LANE), jnp.float32),
        grid_spec=pltpu.PrefetchScalarGridSpec(
            num_scalar_prefetch=0,
            grid=grid,
            in_specs=[
                pl.BlockSpec((Bt * S, E), lambda i: (i, 0)),       # x: per-block
                pl.BlockSpec((NSH * E, C), lambda i: (0, 0)),      # weights stay
                pl.BlockSpec((C, LANE), lambda i: (0, 0)),         # VMEM-resident
                pl.BlockSpec((8, C), lambda i: (0, 0)),
                pl.BlockSpec((S, C), lambda i: (0, 0)),
            ],
            out_specs=pl.BlockSpec((Bt, LANE), lambda i: (i, 0)),  # lane-dense
        ),
        compiler_params=pltpu.CompilerParams(
            dimension_semantics=("parallel",)),                    # v7x: 2 TCs
    )(x_flat, conv_w, fc_w, aux, mask)
    return out[:, :NUM_CLASSES]


def ref_forward(x, params):
    """Pure-JAX f32 reference mirroring the PyTorch forward (unfused)."""
    B, S, E = x.shape
    feats = []
    for fs, wk, bk in ((2, 'w2', 'b2'), (3, 'w3', 'b3'), (4, 'w4', 'b4')):
        w = params[wk]                       # (fs, E, F)
        bb = params[bk]                      # (1, F)
        L = S - fs + 1
        windows = jnp.stack([x[:, d:d + L, :] for d in range(fs)], axis=2)  # (B,L,fs,E)
        conv = jnp.einsum('blde,def->blf', windows, w) + bb                 # (B,L,F)
        conv = jnp.maximum(conv, 0.0)
        feats.append(jnp.max(conv, axis=1))                                 # (B,F)
    feats = jnp.concatenate(feats, axis=1)                                  # (B,3F)
    h = feats @ params['fc1_w'] + params['fc1_b']
    logits = h @ params['fc2_w'] + params['fc2_b']
    return jax.nn.softmax(logits, axis=1)


if __name__ == "__main__":
    B, S, E, F = 2, 16, 32, 32               # batch, seq, emb dim, num_filter
    key = jax.random.PRNGKey(0)
    ks = jax.random.split(key, 11)

    def init(k, shape, fan_in):
        bound = 1.0 / (fan_in ** 0.5)
        return jax.random.uniform(k, shape, jnp.float32, -bound, bound)

    params = {
        'w2': init(ks[0], (2, E, F), 2 * E), 'b2': init(ks[1], (1, F), 2 * E),
        'w3': init(ks[2], (3, E, F), 3 * E), 'b3': init(ks[3], (1, F), 3 * E),
        'w4': init(ks[4], (4, E, F), 4 * E), 'b4': init(ks[5], (1, F), 4 * E),
        'fc1_w': init(ks[6], (3 * F, 128), 3 * F), 'fc1_b': init(ks[7], (1, 128), 3 * F),
        'fc2_w': init(ks[8], (128, NUM_CLASSES), 128),
        'fc2_b': init(ks[9], (1, NUM_CLASSES), 128),
    }
    x = jax.random.normal(ks[10], (B, S, E), jnp.float32)

    out = jax.block_until_ready(cnn2d_forward(x, params))
    ref = ref_forward(x, params)

    assert out.shape == (B, NUM_CLASSES)
    # bf16 MXU operands -> compare against the f32 reference at ~1e-2 tolerance.
    assert jnp.allclose(out, ref, atol=2e-2, rtol=2e-2), (out, ref)
    assert jnp.allclose(jnp.sum(out, axis=1), 1.0, atol=1e-5)
    print("KERNEL_OK")
</pallas_src>

<mosaic_0001>
module attributes {stable_mosaic.version = 11 : i64} {
  func.func @cnn2d_kernel(%arg0: i32, %arg1: memref<32x32xf32, #tpu.memory_space<vmem>>, %arg2: memref<128x128xbf16, #tpu.memory_space<vmem>>, %arg3: memref<128x128xbf16, #tpu.memory_space<vmem>>, %arg4: memref<8x128xf32, #tpu.memory_space<vmem>>, %arg5: memref<16x128xf32, #tpu.memory_space<vmem>>, %arg6: memref<2x128xf32, #tpu.memory_space<vmem>>) attributes {dimension_semantics = [#tpu.dimension_semantics<parallel>], iteration_bounds = array<i64: 1>, scalar_prefetch = 0 : i64, scratch_operands = 0 : i64, tpu.core_type = #tpu.core_type<tc>, window_params = [{transform_indices = @transform_0, window_bounds = array<i64: 32, 32>}, {pipeline_mode = #tpu.pipeline_mode<synchronous>, transform_indices = @transform_1, window_bounds = array<i64: 128, 128>}, {pipeline_mode = #tpu.pipeline_mode<synchronous>, transform_indices = @transform_2, window_bounds = array<i64: 128, 128>}, {pipeline_mode = #tpu.pipeline_mode<synchronous>, transform_indices = @transform_3, window_bounds = array<i64: 8, 128>}, {pipeline_mode = #tpu.pipeline_mode<synchronous>, transform_indices = @transform_4, window_bounds = array<i64: 16, 128>}, {transform_indices = @transform_5, window_bounds = array<i64: 2, 128>}]} {
    %c0 = arith.constant 0 : index
    %c0_0 = arith.constant 0 : index
    %0 = vector.load %arg1[%c0, %c0_0] : memref<32x32xf32, #tpu.memory_space<vmem>>, vector<32x32xf32>
    %c31_i32 = arith.constant 31 : i32
    %1 = tpu.dynamic_rotate %0 by %c31_i32 dim 0 : vector<32x32xf32>, i32 -> vector<32x32xf32>
    %c30_i32 = arith.constant 30 : i32
    %2 = tpu.dynamic_rotate %0 by %c30_i32 dim 0 : vector<32x32xf32>, i32 -> vector<32x32xf32>
    %c29_i32 = arith.constant 29 : i32
    %3 = tpu.dynamic_rotate %0 by %c29_i32 dim 0 : vector<32x32xf32>, i32 -> vector<32x32xf32>
    %4 = tpu.concatenate %0, %1, %2, %3 in 1 : vector<32x32xf32>, vector<32x32xf32>, vector<32x32xf32>, vector<32x32xf32> -> vector<32x128xf32>
    %5 = arith.truncf %4 : vector<32x128xf32> to vector<32x128xbf16>
    %c0_1 = arith.constant 0 : index
    %c0_2 = arith.constant 0 : index
    %6 = vector.load %arg2[%c0_1, %c0_2] : memref<128x128xbf16, #tpu.memory_space<vmem>>, vector<128x128xbf16>
    %cst = arith.constant dense<0.000000e+00> : vector<32x128xf32>
    %7 = tpu.matmul %5, %6, %cst {dimension_numbers = #tpu.dot_dimension_numbers<[1], [0], [0], [1], [0, 0, 1, 1], [], []>} : vector<32x128xbf16>, vector<128x128xbf16>, vector<32x128xf32> -> vector<32x128xf32>
    %c0_3 = arith.constant 0 : index
    %c0_4 = arith.constant 0 : index
    %8 = vector.load %arg4[%c0_3, %c0_4] : memref<8x128xf32, #tpu.memory_space<vmem>>, vector<1x128xf32>
    %9 = vector.broadcast %8 : vector<1x128xf32> to vector<32x128xf32>
    %10 = arith.addf %7, %9 : vector<32x128xf32>
    %cst_5 = arith.constant 0.000000e+00 : f32
    %11 = vector.broadcast %cst_5 : f32 to vector<32x128xf32>
    %12 = arith.maximumf %10, %11 : vector<32x128xf32>
    %13 = vector.shape_cast %12 : vector<32x128xf32> to vector<2x16x128xf32>
    %c0_6 = arith.constant 0 : index
    %c0_7 = arith.constant 0 : index
    %14 = vector.load %arg5[%c0_6, %c0_7] : memref<16x128xf32, #tpu.memory_space<vmem>>, vector<16x128xf32>
    %15 = vector.shape_cast %14 : vector<16x128xf32> to vector<1x16x128xf32>
    %16 = vector.broadcast %15 : vector<1x16x128xf32> to vector<2x16x128xf32>
    %17 = arith.mulf %13, %16 : vector<2x16x128xf32>
    %cst_8 = arith.constant dense<0xFF800000> : vector<2x128xf32>
    %18 = vector.multi_reduction <maximumf>, %17, %cst_8 [1] : vector<2x16x128xf32> to vector<2x128xf32>
    %19 = arith.truncf %18 : vector<2x128xf32> to vector<2x128xbf16>
    %c0_9 = arith.constant 0 : index
    %c0_10 = arith.constant 0 : index
    %20 = vector.load %arg3[%c0_9, %c0_10] : memref<128x128xbf16, #tpu.memory_space<vmem>>, vector<128x128xbf16>
    %cst_11 = arith.constant dense<0.000000e+00> : vector<2x128xf32>
    %21 = tpu.matmul %19, %20, %cst_11 {dimension_numbers = #tpu.dot_dimension_numbers<[1], [0], [0], [1], [0, 0, 1, 1], [], []>} : vector<2x128xbf16>, vector<128x128xbf16>, vector<2x128xf32> -> vector<2x128xf32>
    %c1 = arith.constant 1 : index
    %c0_12 = arith.constant 0 : index
    %22 = vector.load %arg4[%c1, %c0_12] : memref<8x128xf32, #tpu.memory_space<vmem>>, vector<1x128xf32>
    %23 = vector.broadcast %22 : vector<1x128xf32> to vector<2x128xf32>
    %24 = arith.addf %21, %23 : vector<2x128xf32>
    %cst_13 = arith.constant dense<0xFF800000> : vector<2xf32>
    %25 = vector.multi_reduction <maximumf>, %24, %cst_13 [1] : vector<2x128xf32> to vector<2xf32>
    %26 = vector.shape_cast %25 : vector<2xf32> to vector<2x1xf32>
    %27 = vector.broadcast %26 : vector<2x1xf32> to vector<2x128xf32>
    %28 = arith.subf %24, %27 : vector<2x128xf32>
    %29 = math.exp %28 : vector<2x128xf32>
    %cst_14 = arith.constant dense<0.000000e+00> : vector<2xf32>
    %30 = vector.multi_reduction <add>, %29, %cst_14 [1] : vector<2x128xf32> to vector<2xf32>
    %31 = vector.shape_cast %30 : vector<2xf32> to vector<2x1xf32>
    %32 = vector.broadcast %31 : vector<2x1xf32> to vector<2x128xf32>
    %33 = arith.divf %29, %32 : vector<2x128xf32>
    %c0_15 = arith.constant 0 : index
    %c0_16 = arith.constant 0 : index
    %34 = vector.load %arg6[%c0_15, %c0_16] : memref<2x128xf32, #tpu.memory_space<vmem>>, vector<2x128xf32>
    tpu.vector_store %arg6[%c0_15, %c0_16], %33 {strides = array<i32>} : memref<2x128xf32, #tpu.memory_space<vmem>>, vector<2x128xf32>,
    return
  }
  func.func @transform_0(%arg0: i32) -> (i32, i32) {
    %c0_i32 = arith.constant 0 : i32
    %c0_i32_0 = arith.constant 0 : i32
    return %arg0, %c0_i32 : i32, i32
  }
  func.func @transform_1(%arg0: i32) -> (i32, i32) {
    %c0_i32 = arith.constant 0 : i32
    %c0_i32_0 = arith.constant 0 : i32
    %c0_i32_1 = arith.constant 0 : i32
    return %c0_i32, %c0_i32_0 : i32, i32
  }
  func.func @transform_2(%arg0: i32) -> (i32, i32) {
    %c0_i32 = arith.constant 0 : i32
    %c0_i32_0 = arith.constant 0 : i32
    %c0_i32_1 = arith.constant 0 : i32
    return %c0_i32, %c0_i32_0 : i32, i32
  }
  func.func @transform_3(%arg0: i32) -> (i32, i32) {
    %c0_i32 = arith.constant 0 : i32
    %c0_i32_0 = arith.constant 0 : i32
    %c0_i32_1 = arith.constant 0 : i32
    return %c0_i32, %c0_i32_0 : i32, i32
  }
  func.func @transform_4(%arg0: i32) -> (i32, i32) {
    %c0_i32 = arith.constant 0 : i32
    %c0_i32_0 = arith.constant 0 : i32
    %c0_i32_1 = arith.constant 0 : i32
    return %c0_i32, %c0_i32_0 : i32, i32
  }
  func.func @transform_5(%arg0: i32) -> (i32, i32) {
    %c0_i32 = arith.constant 0 : i32
    %c0_i32_0 = arith.constant 0 : i32
    return %arg0, %c0_i32 : i32, i32
  }
}

</mosaic_0001>

<bundles_post_ra>
// kernel: tpu_custom_call.1
= control target key start
LH: loop header
LB: loop body
LE: loop exit
PB: predicated region body
PF: predicated region fallthrough
CT: control target
= control target key end

     0   :  { %10 = vsyncpa [#allocation3], 0  ;;  %s903_s0 = inlined_call_operand.hbm [shape: f32[32,32], index: 0, kind: input, shape index: {}]   ;;  %s904_s1 = inlined_call_operand.hbm [shape: bf16[128,128], index: 1, kind: input, shape index: {}]   ;;  %s905_s2 = inlined_call_operand.hbm [shape: bf16[128,128], index: 2, kind: input, shape index: {}]   ;;  %s906_s3 = inlined_call_operand.vmem [shape: f32[8,128], index: 3, kind: input, shape index: {}]   ;;  %s907_s4 = inlined_call_operand.hbm [shape: f32[16,128], index: 4, kind: input, shape index: {}]   ;;  %s908_s5 = inlined_call_operand.hbm [shape: f32[2,128], index: 5, kind: output, shape index: {}]  }
   0x1   :  { %11 = vsyncpa [#allocation6], 0 }
   0x2   :  { %12 = vsyncpa [#allocation9], 0 }
   0x3   :  { %13 = vsyncpa [#allocation4], 0  ;;  %s724_s18 = smov [#allocation5]   ;;  %s606_s22 = scalar_lea.hbm %s904_s1, 1024 }
   0x4   :  { %s31_s19 = sshll.u32 %s724_s18, 4  ;;  %p607_p0 = scmp.ne.s32.totalorder %s904_s1, %s606_s22  ;;  %s32_s19 = int_to_ptr.vmem [resolvable:$true] %s31_s19 }
   0x5   :  { %p610_p1 = scmp.lt.u32.totalorder %s606_s22, %s904_s1 }
   0x7   :  { %p612_p2 = pnand %p610_p1, %p607_p0 }
   0x9   :  { %615 = shalt.err (!%p612_p2)
}
   0xa   :  { %s616_s27 = scalar_lea.vmem %s32_s19, 1024  ;;  %p621_p4 = scmp.lt.s32.totalorder %s32_s19, %s32_s19 }
   0xb   :  { %p617_p3 = scmp.ne.s32.totalorder %s32_s19, %s616_s27  ;;  %p622_p5 = scmp.lt.s32.totalorder %s616_s27, %s616_s27 }
   0xd   :  { %p623_p6 = por %p622_p5, %p621_p4 }
   0xf   :  { %p624_p7 = pnand %p623_p6, %p617_p3 }
  0x11   :  { %627 = shalt.err (!%p624_p7)
}
  0x12   :  { %s725_s28 = smov 64   ;;  %s726_s29 = smov 4  }
  0x13   :  { %37 = dma.hbm_to_vmem [thread:$0]  %s904_s1, 1024, %s32_s19, [#allocation6], %s725_s28, %s725_s28, %s726_s29  }
  0x14   :  { %s727_s7 = smov [#allocation2]   ;;  %s628_s11 = scalar_lea.hbm %s903_s0, 512 }
  0x15   :  { %s19_s8 = sshll.u32 %s727_s7, 4  ;;  %p629_p8 = scmp.ne.s32.totalorder %s903_s0, %s628_s11  ;;  %s20_s8 = int_to_ptr.vmem [resolvable:$true] %s19_s8 }
  0x16   :  { %p632_p9 = scmp.lt.u32.totalorder %s628_s11, %s903_s0 }
  0x18   :  { %p634_p10 = pnand %p632_p9, %p629_p8 }
  0x1a   :  { %637 = shalt.err (!%p634_p10)
}
  0x1b   :  { %s638_s16 = scalar_lea.vmem %s20_s8, 512  ;;  %p643_p12 = scmp.lt.s32.totalorder %s20_s8, %s20_s8 }
  0x1c   :  { %p639_p11 = scmp.ne.s32.totalorder %s20_s8, %s638_s16  ;;  %p644_p13 = scmp.lt.s32.totalorder %s638_s16, %s638_s16 }
  0x1e   :  { %p645_p0 = por %p644_p13, %p643_p12 }
  0x20   :  { %p646_p1 = pnand %p645_p0, %p639_p11 }
  0x22   :  { %649 = shalt.err (!%p646_p1)
}
  0x23   :  { %s728_s1 = smov 128   ;;  %s729_s17 = smov 8  }
  0x24   :  { %25 = dma.hbm_to_vmem [thread:$0]  %s903_s0, 512, %s20_s8, [#allocation3], %s728_s1, %s728_s1, %s729_s17  }
  0x25   :  { %s730_s20 = smov [#allocation7]   ;;  %s731_s22 = smov [#allocation8]  }
  0x26   :  { %s43_s21 = sshll.u32 %s730_s20, 4  ;;  %s57_s23 = sshll.u32 %s731_s22, 4  ;;  %s44_s21 = int_to_ptr.vmem [resolvable:$true] %s43_s21  ;;  %s797_s23 = int_to_ptr.vmem [resolvable:$true] %s57_s23 }
  0x27   :  { %s650_s26 = scalar_lea.hbm %s905_s2, 1024 }
  0x28   :  { %p651_p2 = scmp.ne.s32.totalorder %s905_s2, %s650_s26  ;;  %p654_p3 = scmp.lt.u32.totalorder %s650_s26, %s905_s2 }
  0x2a   :  { %p656_p4 = pnand %p654_p3, %p651_p2 }
  0x2c   :  { %659 = shalt.err (!%p656_p4)
}
  0x2d   :  { %s660_s0 = scalar_lea.vmem %s44_s21, 1024  ;;  %p665_p6 = scmp.lt.s32.totalorder %s44_s21, %s44_s21 }
  0x2e   :  { %p661_p5 = scmp.ne.s32.totalorder %s44_s21, %s660_s0  ;;  %p666_p7 = scmp.lt.s32.totalorder %s660_s0, %s660_s0 }
  0x30   :  { %p667_p8 = por %p666_p7, %p665_p6 }
  0x32   :  { %p668_p9 = pnand %p667_p8, %p661_p5 }
  0x34   :  { %671 = shalt.err (!%p668_p9)
}
  0x35   :  { %49 = dma.hbm_to_vmem [thread:$0]  %s905_s2, 1024, %s44_s21, [#allocation6], %s725_s28, %s725_s28, %s726_s29  }
  0x36   :  { %s672_s12 = scalar_lea.hbm %s907_s4, 256 }
  0x37   :  { %p673_p10 = scmp.ne.s32.totalorder %s907_s4, %s672_s12  ;;  %p676_p11 = scmp.lt.u32.totalorder %s672_s12, %s907_s4 }
  0x39   :  { %p678_p12 = pnand %p676_p11, %p673_p10 }
  0x3b   :  { %681 = shalt.err (!%p678_p12)
}
  0x3c   :  { %s682_s18 = scalar_lea.vmem %s797_s23, 256  ;;  %p687_p0 = scmp.lt.s32.totalorder %s797_s23, %s797_s23 }
  0x3d   :  { %p683_p13 = scmp.ne.s32.totalorder %s797_s23, %s682_s18  ;;  %p688_p1 = scmp.lt.s32.totalorder %s682_s18, %s682_s18 }
  0x3f   :  { %p689_p2 = por %p688_p1, %p687_p0 }
  0x41   :  { %p690_p3 = pnand %p689_p2, %p683_p13 }
  0x43   :  { %693 = shalt.err (!%p690_p3)
}
  0x44   :  { %63 = dma.hbm_to_vmem [thread:$0]  %s907_s4, 256, %s797_s23, [#allocation9], %s728_s1, %s728_s1, %s729_s17  }
  0x45   :  { %716 = dma.done.wait [#allocation3], 512  }
  0x46   :  { %717 = vsyncadd [#allocation3], 4294966784 }
  0x47   :  { %718 = dma.done.wait [#allocation6], 2048  }
  0x48   :  { %719 = vsyncadd [#allocation6], 4294965248 }
  0x49   :  { %720 = dma.done.wait [#allocation9], 256  }
  0x4a   :  { %721 = vsyncadd [#allocation9], 4294967040  ;;  %v85_v0 = vlaneseq  ;;  %v834_v2 = vld [vmem:[#allocation2] sm:$0xff]  ;;  %v836_v3 = vld [vmem:[#allocation2 + $0x8] sm:$0xff]  ;;  %s732_s4 = smov 32   ;;  %v733_v41 = vmov 0.0  }
  0x4b   :  { %v838_v4 = vld [vmem:[#allocation2 + $0x10] sm:$0xff]  ;;  %v92_v5 = vrot.slane %v834_v2, 2  ;;  %v93_v6 = vrot.slane %v836_v3, 2  ;;  %v81_v8 = vrot.slane %v834_v2, 1  ;;  %v844_v9 = vld [vmem:[#allocation2 + $0x18] sm:$0xff]  ;;  %v586_v10 = vld [vmem:[#allocation5] sm:$0xff]   ;;  %523 = vmatprep.subr.bf16.mxu1 %v733_v41 }
  0x4c   :  { %v86_v1 = vshrl.u32 %v85_v0, 7  ;;  %v94_v7 = vrot.slane %v838_v4, 2  ;;  %v82_v11 = vrot.slane %v836_v3, 1  ;;  %v83_v12 = vrot.slane %v838_v4, 1  ;;  %503 = vmatprep.subr.bf16.mxu0 %v586_v10  ;;  %v587_v23 = vld [vmem:[#allocation5 + $0x8] sm:$0xff]   ;;  %v588_v28 = vld [vmem:[#allocation5 + $0x10] sm:$0xff]  }
  0x4d   :  { %v95_v13 = vrot.slane %v844_v9, 2  ;;  %v84_v14 = vrot.slane %v844_v9, 1  ;;  %v101_v17 = vrot.slane %v834_v2, 3  ;;  %v103_v18 = vrot.slane %v838_v4, 3  ;;  %504 = vmatpush3.bf16.msra.mxu0 %v586_v10  ;;  %v589_v37 = vld [vmem:[#allocation5 + $0x18] sm:$0xff]   ;;  %v590_v40 = vld [vmem:[#allocation5 + $0x20] sm:$0xff]  }
  0x4e   :  { %vm96_vm0 = vcmp.lt.s32.totalorder %v86_v1, 6  ;;  %vm87_vm1 = vcmp.lt.s32.totalorder %v86_v1, 7  ;;  %vm105_vm2 = vcmp.lt.s32.totalorder %v86_v1, 5  ;;  %v104_v30 = vrot.slane %v844_v9, 3  ;;  %505 = vmatprep.subr.bf16.mxu0 %v587_v23  ;;  %s734_s1 = smov 96   ;;  %v591_v42 = vld [vmem:[#allocation5 + $0x28] sm:$0xff]  }
  0x4f   :  { %v98_v15 = vsel %vm96_vm0, %v93_v6, %v94_v7  ;;  %v99_v16 = vsel %vm96_vm0, %v92_v5, %v93_v6  ;;  %v89_v20 = vsel %vm87_vm1, %v82_v11, %v83_v12  ;;  %v90_v21 = vsel %vm87_vm1, %v81_v8, %v82_v11  ;;  %v592_v43 = vld [vmem:[#allocation5 + $0x30] sm:$0xff]   ;;  %v593_v44 = vld [vmem:[#allocation5 + $0x38] sm:$0xff]   ;;  %s736_s21 = smov [#allocation10]  }
  0x50   :  { %v566_v19 = vpack.i.bf16 %v98_v15, %v99_v16  ;;  %v97_v22 = vsel %vm96_vm0, %v94_v7, %v95_v13  ;;  %v556_v24 = vpack.i.bf16 %v89_v20, %v90_v21  ;;  %v100_v25 = vsel %vm96_vm0, %v95_v13, %v92_v5  ;;  %v596_v15 = vld [vmem:[#allocation7 + $0x10] sm:$0xff]   ;;  %v597_v16 = vld [vmem:[#allocation7 + $0x18] sm:$0xff]   ;;  %v466_v21 = vld [vmem:[%s906_s3] ss:$0 sm:$0xff]  ;;  %s455_s22 = sshll.u32 %s736_s21, 4  ;;  %s456_s22 = int_to_ptr.vmem [resolvable:$true] %s455_s22 }
  0x51   :  { %v88_v26 = vsel %vm87_vm1, %v83_v12, %v84_v14  ;;  %v91_v27 = vsel %vm87_vm1, %v84_v14, %v81_v8  ;;  %v571_v29 = vpack.i.bf16 %v100_v25, %v97_v22  ;;  %v102_v31 = vrot.slane %v836_v3, 3  ;;  %506 = vmatpush3.bf16.msra.mxu0 %v587_v23  ;;  %v595_v14 = vld [vmem:[#allocation7 + $0x8] sm:$0xff]   ;;  %v601_v20 = vld [vmem:[#allocation7 + $0x38] sm:$0xff]   ;;  %p699_p5 = scmp.lt.s32.totalorder %s456_s22, %s456_s22 }
  0x52   :  { %567 = vrot.lane.b32.xlu1 %v566_v19, %s725_s28  ;;  %557 = vrot.lane.b32.xlu0 %v556_v24, %s732_s4  ;;  %v561_v32 = vpack.i.bf16 %v91_v27, %v88_v26  ;;  %v106_v33 = vsel %vm105_vm2, %v103_v18, %v104_v30  ;;  %v109_v34 = vsel %vm105_vm2, %v104_v30, %v101_v17  ;;  %vm158_vm3 = vcmask 261120   ;;  %v600_v19 = vld [vmem:[#allocation7 + $0x30] sm:$0xff]   ;;  %v297_v30 = vld [vmem:[#allocation8] sm:$0xff] }
  0x53   :  { %v107_v35 = vsel %vm105_vm2, %v102_v31, %v103_v18  ;;  %v108_v36 = vsel %vm105_vm2, %v101_v17, %v102_v31  ;;  %507 = vmatprep.subr.bf16.mxu0 %v588_v28  ;;  %v581_v38 = vpack.i.bf16 %v109_v34, %v106_v33  ;;  %vm163_vm4 = vcmask 523264   ;;  %v598_v17 = vld [vmem:[#allocation7 + $0x20] sm:$0xff]   ;;  %v599_v18 = vld [vmem:[#allocation7 + $0x28] sm:$0xff]  }
  0x54   :  { %v576_v39 = vpack.i.bf16 %v107_v35, %v108_v36  ;;  %vm168_vm5 = vcmask 785408   ;;  %vm735_vm6 = vmmov 0   ;;  %vm344_vm7 = vcmask 1041409  }
  0x55   :  { %508 = vmatpush3.bf16.msra.mxu0 %v588_v28  ;;  %539 = vmatprep.mubr.msk.bf16.mxu1 %vm735_vm6, %v733_v41  ;;  %vm436_vm8 = vcmask 1041408  }
  0x56   :  { %572 = vrot.lane.b32.xlu1 %v571_v29, %s725_s28  ;;  %562 = vrot.lane.b32.xlu0 %v561_v32, %s732_s4  ;;  %v298_v32 = vld [vmem:[#allocation8 + $0x8] sm:$0xff] }
  0x57   :  { %509 = vmatprep.subr.bf16.mxu0 %v589_v37 }
  0x59   :  { %510 = vmatpush3.bf16.msra.mxu0 %v589_v37 }
  0x5a   :  { %582 = vrot.lane.b32.xlu1 %v581_v38, %s734_s1  ;;  %577 = vrot.lane.b32.xlu0 %v576_v39, %s734_s1 }
  0x5b   :  { %511 = vmatprep.subr.bf16.mxu0 %v590_v40 }
  0x5d   :  { %512 = vmatpush3.bf16.msra.mxu0 %v590_v40 }
  0x5e   :  { %513 = vmatprep.subr.bf16.mxu0 %v591_v42 }
  0x61   :  { %514 = vmatpush3.bf16.msra.mxu0 %v591_v42 }
  0x62   :  { %515 = vmatprep.subr.bf16.mxu0 %v592_v43 }
  0x65   :  { %516 = vmatpush3.bf16.msra.mxu0 %v592_v43 }
  0x66   :  { %517 = vmatprep.subr.bf16.mxu0 %v593_v44 }
  0x69   :  { %518 = vmatpush3.bf16.msra.mxu0 %v593_v44 }
  0xc4   :  { %v568_v45 = vpop.permute.xlu1 %567  ;;  %v558_v46 = vpop.permute.xlu0 %557 }
  0xc5   :  { %v560_v47 = vunpack.i.h.bf16 %v558_v46  ;;  %v559_v48 = vunpack.i.l.bf16 %v558_v46  ;;  %v570_v55 = vunpack.i.h.bf16 %v568_v45  ;;  %v569_v56 = vunpack.i.l.bf16 %v568_v45 }
  0xc7   :  { %v159_v60 = vsel %vm158_vm3, %v834_v2, %v559_v48  ;;  %v160_v61 = vsel %vm158_vm3, %v836_v3, %v560_v47  ;;  %v594_v3 = vld [vmem:[#allocation7] sm:$0xff]  }
  0xc8   :  { %v573_v49 = vpop.permute.xlu1 %572  ;;  %v563_v50 = vpop.permute.xlu0 %562  ;;  %v164_v8 = vsel %vm163_vm4, %v159_v60, %v569_v56  ;;  %v165_v10 = vsel %vm163_vm4, %v160_v61, %v570_v55  ;;  %524 = vmatpush3.bf16.msra.mxu1 %v594_v3  ;;  %v475_v60 = vld [vmem:[%s906_s3 + $0x1] ss:$0 sm:$0xff]  ;;  %s694_s3 = scalar_lea.vmem %s456_s22, 32 }
  0xc9   :  { %v575_v51 = vunpack.i.h.bf16 %v573_v49  ;;  %v574_v52 = vunpack.i.l.bf16 %v573_v49  ;;  %v565_v53 = vunpack.i.h.bf16 %v563_v50  ;;  %v564_v54 = vunpack.i.l.bf16 %v563_v50  ;;  %525 = vmatprep.subr.bf16.mxu1 %v733_v41  ;;  %p695_p4 = scmp.ne.s32.totalorder %s456_s22, %s694_s3  ;;  %p700_p6 = scmp.lt.s32.totalorder %s694_s3, %s694_s3 }
  0xcb   :  { %v162_v57 = vsel %vm158_vm3, %v844_v9, %v565_v53  ;;  %v161_v58 = vsel %vm158_vm3, %v838_v4, %v564_v54  ;;  %p701_p7 = por %p700_p6, %p699_p5 }
  0xcc   :  { %v583_v59 = vpop.permute.xlu1 %582  ;;  %v578_v0 = vpop.permute.xlu0 %577  ;;  %v166_v6 = vsel %vm163_vm4, %v161_v58, %v574_v52  ;;  %v167_v7 = vsel %vm163_vm4, %v162_v57, %v575_v51  ;;  %526 = vmatpush3.bf16.msra.mxu1 %v595_v14 }
  0xcd   :  { %v585_v62 = vunpack.i.h.bf16 %v583_v59  ;;  %v584_v63 = vunpack.i.l.bf16 %v583_v59  ;;  %v580_v1 = vunpack.i.h.bf16 %v578_v0  ;;  %v579_v5 = vunpack.i.l.bf16 %v578_v0  ;;  %527 = vmatprep.subr.bf16.mxu1 %v733_v41  ;;  %p702_p8 = pnand %p701_p7, %p695_p4 }
  0xcf   :  { %v171_v11 = vsel %vm168_vm5, %v166_v6, %v584_v63  ;;  %v172_v9 = vsel %vm168_vm5, %v167_v7, %v585_v62  ;;  %v169_v4 = vsel %vm168_vm5, %v164_v8, %v579_v5  ;;  %v170_v12 = vsel %vm168_vm5, %v165_v10, %v580_v1 }
  0xd0   :  { %v174_v2 = vpack.c.bf16 %v172_v9, %v171_v11  ;;  %v173_v13 = vpack.c.bf16 %v170_v12, %v169_v4  ;;  %528 = vmatpush3.bf16.msra.mxu1 %v596_v15 }
  0xd1   :  { %529 = vmatprep.subr.bf16.mxu1 %v733_v41 }
  0xd2   :  { %519 = vmatprep.mubr.bf16.mxu0 %v173_v13 }
  0xd3   :  { %520 = vmatmul.mubr.bf16.vlgmr.msra.gmra.mrb[0].mxu0 %v174_v2 }
  0xd4   :  { %530 = vmatpush3.bf16.msra.mxu1 %v597_v16 }
  0xd5   :  { %531 = vmatprep.subr.bf16.mxu1 %v733_v41 }
  0xd8   :  { %532 = vmatpush3.bf16.msra.mxu1 %v598_v17 }
  0xd9   :  { %533 = vmatprep.subr.bf16.mxu1 %v733_v41 }
  0xdc   :  { %534 = vmatpush3.bf16.msra.mxu1 %v599_v18 }
  0xdd   :  { %535 = vmatprep.subr.bf16.mxu1 %v733_v41 }
  0xe0   :  { %536 = vmatpush3.bf16.msra.mxu1 %v600_v19 }
  0xe1   :  { %537 = vmatprep.subr.bf16.mxu1 %v733_v41 }
  0xe4   :  { %538 = vmatpush3.bf16.msra.mxu1 %v601_v20 }
 0x1a6   :  { %v521_v22 = vpop.f32.mrb[0].mxu0 }
 0x1a7   :  { %v287_v23 = vadd.f32 %v521_v22, %v466_v21  ;;  %v278_v24 = vpop.f32.mrb[1].mxu0 }
 0x1a8   :  { %v279_v25 = vadd.f32 %v466_v21, %v278_v24  ;;  %v522_v26 = vpop.f32.mrb[2].mxu0 }
 0x1a9   :  { %v295_v27 = vmax.f32 %v287_v23, 0.0  ;;  %v290_v28 = vadd.f32 %v522_v26, %v466_v21  ;;  %v281_v29 = vpop.f32.mrb[3].mxu0 }
 0x1aa   :  { %v293_v31 = vmax.f32 %v279_v25, 0.0  ;;  %v282_v33 = vadd.f32 %v466_v21, %v281_v29 }
 0x1ab   :  { %v296_v34 = vmax.f32 %v290_v28, 0.0  ;;  %v301_v36 = vmul.f32 %v297_v30, %v295_v27 }
 0x1ac   :  { %v294_v35 = vmax.f32 %v282_v33, 0.0  ;;  %v299_v38 = vmul.f32 %v297_v30, %v293_v31 }
 0x1ad   :  { %v302_v37 = vmul.f32 %v298_v32, %v296_v34 }
 0x1ae   :  { %v300_v39 = vmul.f32 %v298_v32, %v294_v35 }
 0x1af   :  { %v310_v40 = vmax.f32 %v301_v36, %v302_v37 }
 0x1b0   :  { %v303_v41 = vmax.f32 %v299_v38, %v300_v39 }
 0x1b1   :  { %v311_v42 = vrot.slane %v310_v40, 4 }
 0x1b2   :  { %v304_v43 = vrot.slane %v303_v41, 4 }
 0x1b3   :  { %v312_v44 = vmax.f32 %v310_v40, %v311_v42 }
 0x1b4   :  { %v305_v45 = vmax.f32 %v303_v41, %v304_v43 }
 0x1b5   :  { %v313_v46 = vrot.slane %v312_v44, 2 }
 0x1b6   :  { %v306_v47 = vrot.slane %v305_v45, 2 }
 0x1b7   :  { %v314_v48 = vmax.f32 %v312_v44, %v313_v46 }
 0x1b8   :  { %v307_v49 = vmax.f32 %v305_v45, %v306_v47 }
 0x1b9   :  { %v315_v50 = vrot.slane %v314_v48, 1 }
 0x1ba   :  { %v308_v51 = vrot.slane %v307_v49, 1 }
 0x1bb   :  { %v316_v52 = vmax.f32 %v314_v48, %v315_v50 }
 0x1bc   :  { %v309_v53 = vmax.f32 %v307_v49, %v308_v51 }
 0x1bd   :  { %v318_v54 = vpack.c.bf16 %v316_v52, %v316_v52 }
 0x1be   :  { %v317_v55 = vpack.c.bf16 %v309_v53, %v309_v53 }
 0x1bf   :  { %v343_v56 = vunpack.c.l.b16 %v318_v54 }
 0x1c0   :  { %v342_v57 = vunpack.c.l.b16 %v317_v55 }
 0x1c2   :  { %v345_v58 = vsel %vm344_vm7, %v343_v56, %v342_v57 }
 0x1c3   :  { %v346_v59 = vpack.c.b16 %v345_v58, %v345_v58 }
 0x1c5   :  { %540 = vmatmul.mubr.bf16.vlgmr.msra.gmra.mrb[0].mxu1 %v346_v59 }
 0x298   :  { %v430_v61 = vpop.f32.mrb[0].mxu1 }
 0x299   :  { %v431_v62 = vadd.f32 %v475_v60, %v430_v61  ;;  %v541_v63 = vpop.f32.mrb[1].mxu1 }
 0x29a   :  { %v433_v0 = vpop.f32.mrb[2].mxu1 }
 0x29b   :  { %v542_v1 = vpop.f32.mrb[3].mxu1  ;;  %v437_v5 = vsel %vm436_vm8, %v431_v62, -inf }
 0x29c   :  { %438 = vmax.xlane.f32.xlu0 %v437_v5 }
 0x329   :  { %v439_v6 = vpop.xlane.xlu0 %438 }
 0x32a   :  { %v440_v7 = vsub.f32 %v431_v62, %v439_v6 }
 0x32c   :  { %v441_v8 = vmul.f32 1.442695, %v440_v7 }
 0x32e   :  { %602 = vpow2.f32 %v441_v8 }
 0x338   :  { %v603_v10 = vpop.eup %602 }
 0x339   :  { %v443_v11 = vsel %vm436_vm8, %v603_v10, 0.0 }
 0x33a   :  { %444 = vadd.xlane.f32.xlu1 %v443_v11 }
 0x3c7   :  { %v445_v9 = vpop.xlane.xlu1 %444 }
 0x3c8   :  { %604 = vrcp.f32 %v445_v9 }
 0x3d2   :  { %v605_v4 = vpop.eup %604 }
 0x3d3   :  { %v447_v12 = vmul.f32 %v605_v4, %v603_v10 }
 0x3d5   :  { %448 = vst [vmem:[#allocation10] sm:$0x3] %v447_v12 }
 0x3d6   :  { %705 = shalt.err (!%p702_p8)
}
 0x3d7   :  { %s706_s25 = scalar_lea.hbm %s908_s5, 32 }
 0x3d8   :  { %p707_p9 = scmp.ne.s32.totalorder %s908_s5, %s706_s25  ;;  %p710_p10 = scmp.lt.u32.totalorder %s706_s25, %s908_s5 }
 0x3da   :  { %p712_p11 = pnand %p710_p10, %p707_p9 }
 0x3dc   :  { %715 = shalt.err (!%p712_p11)
}
 0x3dd   :  { %458 = dma.vmem_to_hbm [thread:$0]  %s456_s22, 32, %s908_s5, [#allocation4]  }
 0x3de   :  { %722 = dma.done.wait [#allocation4], 32  }
 0x3df   :  { %723 = vsyncadd [#allocation4], 4294967264 }
 0x3e0   :  { %462 = vsyncpa [#allocation3], 1 }
 0x3e1   :  { %463 = vsyncpa [#allocation6], 1 }
 0x3e2   :  { %464 = vsyncpa [#allocation9], 1 }
 0x3e3   :  { %465 = vsyncpa [#allocation4], 1 }

</bundles_post_ra>
